<compile_context>
chip_gen: v6e
topology: v6e:2x2x1
jax: 0.10.0
libtpu: 0.0.40
codegen_flags: <defaults>
</compile_context>

<pallas_src>
import jax
import jax.numpy as jnp
from jax.experimental import pallas as pl
from jax.experimental.pallas import tpu as pltpu


def _dma_copy_kernel(x_hbm, o_hbm, sem):
    # Single whole-array HBM -> HBM DMA; no VMEM staging, no vector load/store.
    cp = pltpu.make_async_copy(x_hbm, o_hbm, sem)
    cp.start()
    cp.wait()


def _hbm_copy(x: jax.Array) -> jax.Array:
    """Identity copy of `x` into a fresh HBM buffer via one async DMA."""
    nbytes = x.size * jnp.dtype(x.dtype).itemsize
    return pl.pallas_call(
        _dma_copy_kernel,
        out_shape=jax.ShapeDtypeStruct(x.shape, x.dtype),
        in_specs=[pl.BlockSpec(memory_space=pl.ANY)],
        out_specs=pl.BlockSpec(memory_space=pl.ANY),
        scratch_shapes=[pltpu.SemaphoreType.DMA],
        cost_estimate=pl.CostEstimate(
            flops=0,
            transcendentals=0,
            bytes_accessed=2 * nbytes,  # read + write, mem-bound
        ),
    )(x)


def squeeze_layer(x: jax.Array, *, copy: bool = False) -> jax.Array:
    """Pallas equivalent of `x.squeeze()` (drop all size-1 dims).

    Default (copy=False): metadata-only reshape — squeeze on a contiguous
    array moves no bytes, matching the perf-review recommendation.
    copy=True: route the payload through a single HBM->HBM DMA Pallas kernel
    and reshape the fresh buffer.
    """
    out_shape = tuple(d for d in x.shape if d != 1)
    if not copy or x.ndim == 0 or x.size == 0:
        return jnp.reshape(x, out_shape)
    y = _hbm_copy(x)
    return jnp.reshape(y, out_shape)


def squeeze_layer_pallas(x: jax.Array) -> jax.Array:
    """Explicit Pallas-kernel path (fresh output buffer)."""
    return squeeze_layer(x, copy=True)


if __name__ == "__main__":
    k0, k1, k2 = jax.random.split(jax.random.PRNGKey(0), 3)

    # 1) NCHW input with a singleton channel dim: [2, 1, 16, 16] -> [2, 16, 16]
    x = jax.random.normal(k0, (2, 1, 16, 16), dtype=jnp.float32)
    ref = jnp.squeeze(x)
    out_fast = jax.block_until_ready(squeeze_layer(x))            # metadata path
    out_krnl = jax.block_until_ready(squeeze_layer_pallas(x))     # DMA kernel path
    assert out_fast.shape == ref.shape and out_fast.dtype == ref.dtype
    assert out_krnl.shape == ref.shape and out_krnl.dtype == ref.dtype
    assert bool(jnp.array_equal(out_fast, ref))
    assert bool(jnp.array_equal(out_krnl, ref))

    # 2) Typical YOLO-v1 use after global pooling: [N, C, 1, 1] -> [N, C]
    x2 = jax.random.normal(k1, (2, 256, 1, 1), dtype=jnp.bfloat16)
    ref2 = jnp.squeeze(x2)
    out2 = jax.block_until_ready(squeeze_layer_pallas(x2))
    assert out2.shape == ref2.shape and out2.dtype == ref2.dtype
    assert bool(jnp.array_equal(out2, ref2))

    # 3) Odd-sized input (not 128-divisible) — full-ref DMA has no tiling needs.
    x3 = jax.random.normal(k2, (1, 3, 1, 5), dtype=jnp.float32)
    ref3 = jnp.squeeze(x3)
    out3 = jax.block_until_ready(squeeze_layer_pallas(x3))
    assert out3.shape == ref3.shape and out3.dtype == ref3.dtype
    assert bool(jnp.array_equal(out3, ref3))

    print("KERNEL_OK")
</pallas_src>

<mosaic_0001>
module attributes {stable_mosaic.version = 11 : i64} {
  func.func @_dma_copy_kernel(%arg0: memref<2x1x16x16xf32, #tpu.memory_space<any>>, %arg1: memref<2x1x16x16xf32, #tpu.memory_space<any>>, %arg2: memref<!tpu.dma_semaphore, #tpu.memory_space<semaphore_mem>>) attributes {dimension_semantics = [], scalar_prefetch = 0 : i64, scratch_operands = 1 : i64, tpu.core_type = #tpu.core_type<tc>} {
    tpu.enqueue_dma source(%arg0 : memref<2x1x16x16xf32, #tpu.memory_space<any>>) target(%arg1 : memref<2x1x16x16xf32, #tpu.memory_space<any>>) target_semaphore(%arg2 : memref<!tpu.dma_semaphore, #tpu.memory_space<semaphore_mem>>)
    tpu.wait_dma2 semaphore(%arg2 : memref<!tpu.dma_semaphore, #tpu.memory_space<semaphore_mem>>) src(%arg0 : memref<2x1x16x16xf32, #tpu.memory_space<any>>) dst(%arg1 : memref<2x1x16x16xf32, #tpu.memory_space<any>>)
    return
  }
}

</mosaic_0001>

<bundles_post_ra>
// kernel: tpu_custom_call.1
= control target key start
LH: loop header
LB: loop body
LE: loop exit
PB: predicated region body
PF: predicated region fallthrough
CT: control target
= control target key end

     0   :  { %s30_s6 = smov [#allocation2]   ;;  %s31_s7 = smov 131072   ;;  %s49_s0 = inlined_call_operand.hbm [shape: f32[2,1,16,16], index: 0, kind: input, shape index: {}]   ;;  %s50_s1 = inlined_call_operand.hbm [shape: f32[2,1,16,16], index: 1, kind: output, shape index: {}]  }
   0x1   :  { %s32_s8 = smov 0  }
   0x2   :  { %12 = dma.general %s49_s0, 512, %s50_s1, %s30_s6, %s31_s7, [#allocation4], %s32_s8, 0  }
   0x3   :  { %28 = dma.done.wait [#allocation2], 512 }
   0x4   :  { %29 = vsyncadd [#allocation2], 4294966784 }
   0x5   :  { %18 = vsyncmov [#allocation2] }
   0x8   :  { %s19_s13 = vpop.sfrf %18 }
   0x9   :  { %p24_p0 = scmp.ne.s32.totalorder %s19_s13, 0 }
   0xb   :  { %23 = shalt.err (%p24_p0)  }

</bundles_post_ra>
